<compile_context>
chip_gen: v7x
topology: tpu7x:2x2x1
jax: 0.10.0
libtpu: 0.0.40
codegen_flags: <defaults>
</compile_context>

<pallas_src>
import functools
import math

import jax
import jax.numpy as jnp
from jax.experimental import pallas as pl
from jax.experimental.pallas import tpu as pltpu


def _rope_kernel(coef_ref, out_ref, *, tile_rows, pack, offset):
    """One (tile_rows, pack*dim) tile of the lane-packed RoPE angle table.

    Packed layout: packed row g, lane l  <->  original row g*pack + l // dim,
    column l % dim.  coef_ref[0] holds scale * concat(inv_freq, inv_freq)
    tiled `pack` times; coef_ref[1] holds (l // dim) as f32.  Hence

        out[g, l] = (g*pack + l//dim + offset) * scale * inv_freq[l % dim]
                  = ((g*pack + offset) + coef[1, l]) * coef[0, l]
    """
    i = pl.program_id(0)
    # Exact integer row math (int32); convert to f32 only at the end.
    row = jax.lax.broadcasted_iota(jnp.int32, (tile_rows, 1), 0) + i * tile_rows
    pos = (row * pack).astype(jnp.float32) + offset               # (tile_rows, 1)
    out_ref[...] = (pos + coef_ref[1:2, :]) * coef_ref[0:1, :]    # (tile_rows, P)


def _grid_semantics():
    """Grid-axis semantics: CORE_PARALLEL on dual-TensorCore chips (v7x) so the
    store-bound grid is split across both cores; plain 'parallel' elsewhere."""
    try:
        kind = str(getattr(jax.devices()[0], "device_kind", "")).lower()
        if "v7" in kind and hasattr(pltpu, "CORE_PARALLEL"):
            return (pltpu.CORE_PARALLEL,)
    except Exception:
        pass
    return ("parallel",)


class RotaryEmbedding:
    """JAX/Pallas port of the PyTorch RotaryEmbedding module."""

    def __init__(self, kv_channels: int, rotary_percent: float,
                 seq_len_interpolation_factor: float = None,
                 rotary_base: int = 10000):
        dim = kv_channels
        if rotary_percent < 1.0:
            dim = int(dim * rotary_percent)
        self.seq_len_interpolation_factor = seq_len_interpolation_factor
        exponent = jnp.arange(0, dim, 2, dtype=jnp.float32) / dim
        self.inv_freq = 1.0 / (float(rotary_base) ** exponent)   # (dim//2,)

    def __call__(self, max_seq_len: int, offset: int = 0,
                 *, max_tile_rows: int = None) -> jax.Array:
        scale = 1.0
        if self.seq_len_interpolation_factor is not None:
            scale = 1.0 / float(self.seq_len_interpolation_factor)

        n_half = int(self.inv_freq.shape[0])
        out_dim = 2 * n_half                      # last dim of the emitted table

        # Lane packing: smallest `pack` with (pack*out_dim) % 128 == 0 so every
        # 128-lane vreg store is dense.  If max_seq_len doesn't divide evenly
        # we emit up to pack-1 padded rows and slice them off below -- never
        # fall back to masked partial stores.
        pack = 1
        if out_dim % 128 != 0:
            pack = 128 // math.gcd(out_dim, 128)
        packed_dim = pack * out_dim
        s_pack = pl.cdiv(max_seq_len, pack)       # packed-row count (padded up)

        # Tiny per-lane coefficients, computed once in plain JAX:
        #   coef[0, l] = scale * inv_freq[l % out_dim mapped to half]  (tiled)
        #   coef[1, l] = l // out_dim  (sub-row index inside a packed row)
        inv_freq_cat = jnp.concatenate([self.inv_freq, self.inv_freq])     # (out_dim,)
        freq_scaled = scale * jnp.tile(inv_freq_cat, pack)                 # (P,)
        lane_sub = (jnp.arange(packed_dim, dtype=jnp.int32) // out_dim
                    ).astype(jnp.float32)                                  # (P,)
        coef = jnp.stack([freq_scaled, lane_sub], axis=0)                  # (2, P)

        # Tile sizing (store-bound kernel):
        #   * ~8 MiB per output buffer (16 MiB double-buffered) so the ~0.35 us
        #     per-grid-step overhead is <5% of the HBM drain even on v7x.
        #   * >= 2 balanced steps when the table is big enough so the grid axis
        #     can be split across v7x's two TensorCores (one extra step on
        #     single-core v5e/v6e is noise).
        row_bytes = packed_dim * 4
        by_vmem = max(8, (8 << 20) // row_bytes)
        tile_rows = min(s_pack, by_vmem)
        if s_pack >= 16:
            two_step = 8 * pl.cdiv(pl.cdiv(s_pack, 2), 8)   # ceil(s_pack/2), 8-aligned
            tile_rows = min(tile_rows, two_step)
        if max_tile_rows is not None:
            tile_rows = min(tile_rows, int(max_tile_rows))
        if s_pack >= 8:
            tile_rows = max(8, (tile_rows // 8) * 8)
        tile_rows = max(1, tile_rows)
        grid = (pl.cdiv(s_pack, tile_rows),)      # partial last block is clamped

        kernel = functools.partial(_rope_kernel, tile_rows=tile_rows,
                                   pack=pack, offset=float(offset))

        packed = pl.pallas_call(
            kernel,
            out_shape=jax.ShapeDtypeStruct((s_pack, packed_dim), jnp.float32),
            grid_spec=pltpu.PrefetchScalarGridSpec(
                num_scalar_prefetch=0,
                grid=grid,
                # Grid-invariant (2, P) coefficient row: whole-array VMEM
                # operand -- no blocking / pipelining bookkeeping needed.
                in_specs=[pl.BlockSpec(memory_space=pltpu.MemorySpace.VMEM)],
                out_specs=pl.BlockSpec((tile_rows, packed_dim),
                                       lambda i: (i, 0)),
            ),
            compiler_params=pltpu.CompilerParams(
                dimension_semantics=_grid_semantics(),
                vmem_limit_bytes=32 * 1024 * 1024),
        )(coef)

        # Row-major un-pack is a pure view of the same bytes; drop the pad rows
        # (if any), then add broadcast axes: (S, out_dim) -> (S, 1, 1, out_dim).
        full = packed.reshape(s_pack * pack, out_dim)[:max_seq_len]
        return full[:, None, None, :]


def _reference(kv_channels, rotary_percent, interp, base, max_seq_len, offset):
    """Pure-JAX reference mirroring the PyTorch forward."""
    dim = kv_channels
    if rotary_percent < 1.0:
        dim = int(dim * rotary_percent)
    inv_freq = 1.0 / (float(base) ** (jnp.arange(0, dim, 2, dtype=jnp.float32) / dim))
    seq = jnp.arange(max_seq_len, dtype=jnp.float32) + offset
    if interp is not None:
        seq = seq * (1.0 / interp)
    freqs = jnp.outer(seq, inv_freq)
    emb = jnp.concatenate([freqs, freqs], axis=-1)
    return emb[:, None, None, :]


def _check(kv_channels, rotary_percent, interp, base, max_seq_len, offset,
           max_tile_rows=None):
    rope = RotaryEmbedding(kv_channels, rotary_percent, interp, base)
    emb = jax.block_until_ready(
        rope(max_seq_len, offset=offset, max_tile_rows=max_tile_rows))
    ref = _reference(kv_channels, rotary_percent, interp, base,
                     max_seq_len, offset)
    assert emb.shape == ref.shape, (emb.shape, ref.shape)
    assert emb.dtype == jnp.float32
    assert jnp.allclose(emb, ref, atol=1e-6, rtol=1e-5), "mismatch vs reference"


if __name__ == "__main__":
    # PRNG key present per spec (this module has no random inputs).
    _ = jax.random.PRNGKey(0)

    # Small, module-consistent case: kv_channels=32, seq=8, interp=2.0, offset=3.
    _check(32, 1.0, 2.0, 10000, max_seq_len=8, offset=3)

    # Lane-packed (dim=32 -> pack=4), two balanced grid steps, partial last block.
    _check(32, 1.0, None, 10000, max_seq_len=1000, offset=0)

    # max_seq_len NOT divisible by pack -> padded rows emitted and sliced off
    # (previously this case fell back to masked partial stores).
    _check(32, 1.0, None, 10000, max_seq_len=1001, offset=7)

    # dim=64 (rotary_percent=0.5) -> pack=2, offset + interpolation; forced
    # smaller tiles to exercise a longer multi-step grid.
    _check(128, 0.5, 1.5, 10000, max_seq_len=1024, offset=5, max_tile_rows=64)

    # dim=128 -> already lane-dense (pack=1), two balanced grid steps.
    _check(128, 1.0, None, 10000, max_seq_len=300, offset=0)

    print("KERNEL_OK")
</pallas_src>

<mosaic_0001>
module attributes {stable_mosaic.version = 11 : i64} {
  func.func @_rope_kernel(%arg0: i32, %arg1: memref<2x128xf32, #tpu.memory_space<vmem>>, %arg2: memref<2x128xf32, #tpu.memory_space<vmem>>) attributes {dimension_semantics = [#tpu.dimension_semantics<parallel>], iteration_bounds = array<i64: 1>, scalar_prefetch = 0 : i64, scratch_operands = 0 : i64, tpu.core_type = #tpu.core_type<tc>, window_params = [{pipeline_mode = #tpu.pipeline_mode<synchronous>, transform_indices = @transform_0, window_bounds = array<i64: 2, 128>}, {transform_indices = @transform_1, window_bounds = array<i64: 2, 128>}]} {
    %0 = tpu.iota {dimensions = array<i32: 0>} : vector<2x1xi32>
    %c2_i32 = arith.constant 2 : i32
    %1 = arith.muli %arg0, %c2_i32 : i32
    %2 = vector.broadcast %1 : i32 to vector<2x1xi32>
    %3 = arith.addi %0, %2 : vector<2x1xi32>
    %c4_i32 = arith.constant 4 : i32
    %4 = vector.broadcast %c4_i32 : i32 to vector<2x1xi32>
    %5 = arith.muli %3, %4 : vector<2x1xi32>
    %6 = arith.sitofp %5 : vector<2x1xi32> to vector<2x1xf32>
    %cst = arith.constant 3.000000e+00 : f32
    %7 = vector.broadcast %cst : f32 to vector<2x1xf32>
    %8 = arith.addf %6, %7 : vector<2x1xf32>
    %c1 = arith.constant 1 : index
    %c0 = arith.constant 0 : index
    %9 = vector.load %arg1[%c1, %c0] : memref<2x128xf32, #tpu.memory_space<vmem>>, vector<1x128xf32>
    %10 = vector.broadcast %8 : vector<2x1xf32> to vector<2x128xf32>
    %11 = vector.broadcast %9 : vector<1x128xf32> to vector<2x128xf32>
    %12 = arith.addf %10, %11 : vector<2x128xf32>
    %c0_0 = arith.constant 0 : index
    %c0_1 = arith.constant 0 : index
    %13 = vector.load %arg1[%c0_0, %c0_1] : memref<2x128xf32, #tpu.memory_space<vmem>>, vector<1x128xf32>
    %14 = vector.broadcast %13 : vector<1x128xf32> to vector<2x128xf32>
    %15 = arith.mulf %12, %14 : vector<2x128xf32>
    %c0_2 = arith.constant 0 : index
    %c0_3 = arith.constant 0 : index
    %16 = vector.load %arg2[%c0_2, %c0_3] : memref<2x128xf32, #tpu.memory_space<vmem>>, vector<2x128xf32>
    tpu.vector_store %arg2[%c0_2, %c0_3], %15 {strides = array<i32>} : memref<2x128xf32, #tpu.memory_space<vmem>>, vector<2x128xf32>,
    return
  }
  func.func @transform_0(%arg0: i32) -> (i32, i32) {
    %c0_i32 = arith.constant 0 : i32
    %c0_i32_0 = arith.constant 0 : i32
    %c0_i32_1 = arith.constant 0 : i32
    return %c0_i32, %c0_i32_0 : i32, i32
  }
  func.func @transform_1(%arg0: i32) -> (i32, i32) {
    %c0_i32 = arith.constant 0 : i32
    %c0_i32_0 = arith.constant 0 : i32
    return %arg0, %c0_i32 : i32, i32
  }
}

</mosaic_0001>

<bundles_post_ra>
// kernel: tpu_custom_call.1
= control target key start
LH: loop header
LB: loop body
LE: loop exit
PB: predicated region body
PF: predicated region fallthrough
CT: control target
= control target key end

     0   :  { %6 = vsyncpa [#allocation3], 0  ;;  %s145_s0 = inlined_call_operand.hbm [shape: f32[2,128], index: 0, kind: input, shape index: {}]   ;;  %s146_s1 = inlined_call_operand.hbm [shape: f32[2,128], index: 1, kind: output, shape index: {}]  }
   0x1   :  { %7 = vsyncpa [#allocation4], 0  ;;  %s109_s6 = smov [#allocation2]   ;;  %s61_s10 = scalar_lea.hbm %s145_s0, 32 }
   0x2   :  { %s14_s7 = sshll.u32 %s109_s6, 4  ;;  %p62_p0 = scmp.ne.s32.totalorder %s145_s0, %s61_s10  ;;  %s15_s7 = int_to_ptr.vmem [resolvable:$true] %s14_s7 }
   0x3   :  { %p65_p1 = scmp.lt.u32.totalorder %s61_s10, %s145_s0 }
   0x5   :  { %p67_p2 = pnand %p65_p1, %p62_p0 }
   0x7   :  { %70 = shalt.err (!%p67_p2)
}
   0x8   :  { %s71_s15 = scalar_lea.vmem %s15_s7, 32  ;;  %p76_p4 = scmp.lt.s32.totalorder %s15_s7, %s15_s7 }
   0x9   :  { %p72_p3 = scmp.ne.s32.totalorder %s15_s7, %s71_s15  ;;  %p77_p5 = scmp.lt.s32.totalorder %s71_s15, %s71_s15 }
   0xb   :  { %p78_p6 = por %p77_p5, %p76_p4 }
   0xd   :  { %p79_p7 = pnand %p78_p6, %p72_p3 }
   0xf   :  { %82 = shalt.err (!%p79_p7)
}
  0x10   :  { %17 = dma.hbm_to_vmem [thread:$0]  %s145_s0, 32, %s15_s7, [#allocation3]  }
  0x11   :  { %105 = dma.done.wait [#allocation3], 32  }
  0x12   :  { %106 = vsyncadd [#allocation3], 4294967264  ;;  %v21_v0 = vlaneseq  ;;  %v57_v4 = vld [vmem:[#allocation2 + $0x1] ss:$0 sm:$0xff]  ;;  %v58_v6 = vld [vmem:[#allocation2] ss:$0 sm:$0xff] }
  0x13   :  { %s110_s18 = smov [#allocation5]  }
  0x14   :  { %v22_v1 = vshrl.u32 %v21_v0, 7  ;;  %s48_s19 = sshll.u32 %s110_s18, 4  ;;  %s49_s19 = int_to_ptr.vmem [resolvable:$true] %s48_s19 }
  0x15   :  { %s83_s20 = scalar_lea.vmem %s49_s19, 32  ;;  %p88_p9 = scmp.lt.s32.totalorder %s49_s19, %s49_s19 }
  0x16   :  { %v26_v2 = vmul.u32 4, %v22_v1  ;;  %p84_p8 = scmp.ne.s32.totalorder %s49_s19, %s83_s20  ;;  %p89_p10 = scmp.lt.s32.totalorder %s83_s20, %s83_s20 }
  0x18   :  { %v27_v3 = vcvt.s32.f32 %v26_v2  ;;  %p90_p11 = por %p89_p10, %p88_p9 }
  0x1a   :  { %v28_v5 = vadd.f32 3.0, %v27_v3  ;;  %p91_p12 = pnand %p90_p11, %p84_p8 }
  0x1c   :  { %v34_v7 = vadd.f32 %v57_v4, %v28_v5 }
  0x1e   :  { %v40_v8 = vmul.f32 %v58_v6, %v34_v7 }
  0x20   :  { %41 = vst [vmem:[#allocation5] sm:$0x3] %v40_v8 }
  0x21   :  { %94 = shalt.err (!%p91_p12)
}
  0x22   :  { %s95_s22 = scalar_lea.hbm %s146_s1, 32 }
  0x23   :  { %p96_p13 = scmp.ne.s32.totalorder %s146_s1, %s95_s22  ;;  %p99_p0 = scmp.lt.u32.totalorder %s95_s22, %s146_s1 }
  0x25   :  { %p101_p1 = pnand %p99_p0, %p96_p13 }
  0x27   :  { %104 = shalt.err (!%p101_p1)
}
  0x28   :  { %51 = dma.vmem_to_hbm [thread:$0]  %s49_s19, 32, %s146_s1, [#allocation4]  }
  0x29   :  { %107 = dma.done.wait [#allocation4], 32  }
  0x2a   :  { %108 = vsyncadd [#allocation4], 4294967264 }
  0x2b   :  { %55 = vsyncpa [#allocation3], 1 }
  0x2c   :  { %56 = vsyncpa [#allocation4], 1 }

</bundles_post_ra>
